<compile_context>
chip_gen: v5e
topology: v5e:2x2
jax: 0.10.0
libtpu: 0.0.40
codegen_flags: <defaults>
</compile_context>

<pallas_src>
import functools

import numpy as np
import jax
import jax.numpy as jnp
from jax import lax
from jax.experimental import pallas as pl
from jax.experimental.pallas import tpu as pltpu


_TM_CAP = 512                 # row-tile cap (sublane axis)
_MAX_UNROLL_CHUNKS = 64       # fully unrolled fold up to this many chunks
_LOOP_GROUP = 8               # chunks folded per fori_loop iteration
_VMEM_BLOCK_CAP = 12 << 20    # padded VMEM footprint cap per (double-buffered) block


def _round_up(x, m):
    return ((x + m - 1) // m) * m


def _sublane_multiple(dtype):
    # packed sub-32-bit dtypes need 16/32 sublanes per native tile
    return {4: 8, 2: 16, 1: 32}.get(jnp.dtype(dtype).itemsize, 8)


def _acc_and_out_dtype(dtype):
    dtype = jnp.dtype(dtype)
    if jnp.issubdtype(dtype, jnp.bool_) or jnp.issubdtype(dtype, jnp.integer):
        # TODO(synk): torch.sum promotes integer inputs to int64; JAX default has
        # no x64, so we accumulate and return int32 instead.
        return jnp.int32, jnp.dtype(jnp.int32)
    return jnp.float32, dtype


@functools.lru_cache(maxsize=1)
def _chip_config():
    kind = ""
    try:
        kind = str(jax.devices()[0].device_kind).lower()
    except Exception:
        pass
    if ("v7" in kind) or ("7x" in kind):
        # 64 MiB VMEM/TC, 2 TensorCores, ~1.6 TB/s HBM per TC.
        return {"target_block": 8 << 20, "vmem_cap": 48 << 20, "dual_tc": True}
    if "v6" in kind:
        # 128 MiB VMEM, ~1.4 TB/s HBM.
        return {"target_block": 8 << 20, "vmem_cap": 96 << 20, "dual_tc": False}
    if "v5" in kind or "v4" in kind:
        return {"target_block": 4 << 20, "vmem_cap": 64 << 20, "dual_tc": False}
    # Unknown: stay conservative but above the scoped default.
    return {"target_block": 4 << 20, "vmem_cap": 48 << 20, "dual_tc": False}


def _vmem_limit(padded_block_bytes, cfg):
    # double-buffered input + acc/output + headroom
    return int(min(cfg["vmem_cap"],
                   max(32 << 20, 2 * padded_block_bytes + (24 << 20))))


# --------------------------------------------------------------------------
# Kernel 1: reduce the lane (last) axis of a (M, K) slab.
#   full=False: per-row sums -> (M, 1)   (lane-dense (grid_m, tm) slab when
#               tm is a multiple of 128; wrapper slices back)
#   full=True : single scalar -> (1, 1)  (both grid axes are reductions)
# --------------------------------------------------------------------------
def _lane_reduce_kernel(x_ref, o_ref, acc_ref, *, M, K, tm, tk, full,
                        acc_dtype, lane_dense):
    i = pl.program_id(0)
    k = pl.program_id(1)
    ni = pl.num_programs(0)
    nk = pl.num_programs(1)

    first = (i == 0) & (k == 0) if full else (k == 0)

    @pl.when(first)
    def _():
        acc_ref[...] = jnp.zeros_like(acc_ref)

    nchunk = tk // 128

    def fold(masked):
        # Fold 128-lane chunks of this tile into a (tm, acc_lanes) partial.
        def chunk(col0, width):
            if isinstance(col0, int):
                xb = x_ref[:, col0:col0 + width]
            else:
                xb = x_ref[:, pl.ds(col0, width)]
            xb = xb.astype(acc_dtype)
            if masked:
                lane = lax.broadcasted_iota(jnp.int32, xb.shape, 1)
                xb = jnp.where(k * tk + col0 + lane < K, xb, 0)
            return xb

        if nchunk <= 1:
            return chunk(0, tk)
        if nchunk <= _MAX_UNROLL_CHUNKS:
            s = chunk(0, 128)
            for j in range(1, nchunk):
                s = s + chunk(j * 128, 128)
            return s

        # Large lane tiles: fori_loop over groups of _LOOP_GROUP 128-lane chunks
        # (wrapper guarantees nchunk % _LOOP_GROUP == 0 here).
        def body(g, s):
            base = pl.multiple_of(g * (_LOOP_GROUP * 128), _LOOP_GROUP * 128)
            for j in range(_LOOP_GROUP):
                s = s + chunk(base + j * 128, 128)
            return s

        return lax.fori_loop(0, nchunk // _LOOP_GROUP, body,
                             jnp.zeros((tm, 128), acc_dtype))

    def accumulate(partial):
        # Full reductions mix padded rows of the last row block into the shared
        # accumulator, so zero them here (cheap: tm x 128 post-fold mask).
        if full and (M % tm != 0):
            rrem = M - i * tm
            row = lax.broadcasted_iota(jnp.int32, partial.shape, 0)
            partial = jnp.where(row < rrem, partial, 0)
        acc_ref[...] += partial

    if (K % tk) != 0:
        # Mask garbage lanes only on the ragged final K tile; interior tiles
        # take the cheap unmasked VPU path.
        @pl.when(k == nk - 1)
        def _():
            accumulate(fold(True))

        @pl.when(k != nk - 1)
        def _():
            accumulate(fold(False))
    else:
        accumulate(fold(False))

    if full:
        @pl.when((i == ni - 1) & (k == nk - 1))
        def _():
            tot = jnp.sum(acc_ref[...], axis=1, keepdims=True)
            o_ref[...] = jnp.sum(tot, axis=0, keepdims=True).astype(o_ref.dtype)
    else:
        @pl.when(k == nk - 1)
        def _():
            if lane_dense:
                # One XLU relayout per output block -> unmasked lane-dense store.
                acc_t = jnp.transpose(acc_ref[...], (1, 0))          # (128, tm)
                o_ref[...] = jnp.sum(acc_t, axis=0,
                                     keepdims=True).astype(o_ref.dtype)
            else:
                o_ref[...] = jnp.sum(acc_ref[...], axis=-1,
                                     keepdims=True).astype(o_ref.dtype)


def _pallas_reduce_rows(x2, cfg, full=False):
    """Sum a (M, K) slab over its last axis -> (M, 1); full=True -> (1, 1)."""
    M, K = x2.shape
    itemsize = jnp.dtype(x2.dtype).itemsize
    sub = _sublane_multiple(x2.dtype)
    acc_dtype, out_dtype = _acc_and_out_dtype(x2.dtype)

    # Row (sublane) tile.
    if M <= sub:
        tm = M                                    # equals full dim: always legal
    else:
        tm = min(_TM_CAP, _round_up(M, sub))
        # v7x only: split a single-block M in two so both TensorCores get work
        # (pointless on single-TC chips and for full reductions).
        if cfg["dual_tc"] and (not full) and tm >= M:
            tm = max(sub, _round_up(-(-M // 2), sub))

    # Lane tile: target ~target_block bytes of real data per step, bounded by
    # the padded VMEM footprint (sublane padding matters when tm < 8).
    if K <= 128:
        tk = K                                    # equals full dim: always legal
    else:
        padded_tm = _round_up(tm, sub)
        real_budget = cfg["target_block"] // max(1, tm * itemsize)
        vmem_budget = _VMEM_BLOCK_CAP // max(1, padded_tm * itemsize)
        budget = max(128, (min(real_budget, vmem_budget) // 128) * 128)
        tk = int(min(_round_up(K, 128), budget))
        if tk // 128 > _MAX_UNROLL_CHUNKS:
            # fori_loop fold needs whole groups of _LOOP_GROUP chunks.
            tk = (tk // (_LOOP_GROUP * 128)) * (_LOOP_GROUP * 128)

    grid_m = pl.cdiv(M, tm)
    grid_k = pl.cdiv(K, tk)
    acc_lanes = 128 if tk >= 128 else tk
    # Lane-dense output path only for nicely-shaped (multiple-of-128) row tiles;
    # everything else has at most a couple of finalize stores anyway.
    lane_dense = (not full) and (tm % 128 == 0) and (acc_lanes == 128)

    if full:
        out_shape = jax.ShapeDtypeStruct((1, 1), out_dtype)
        out_spec = pl.BlockSpec((1, 1), lambda i, k: (0, 0))
        semantics = ("arbitrary", "arbitrary")
    elif lane_dense:
        out_shape = jax.ShapeDtypeStruct((grid_m, tm), out_dtype)
        out_spec = pl.BlockSpec((1, tm), lambda i, k: (i, 0))
        semantics = ("parallel", "arbitrary")
    else:
        out_shape = jax.ShapeDtypeStruct((M, 1), out_dtype)
        out_spec = pl.BlockSpec((tm, 1), lambda i, k: (i, 0))
        semantics = ("parallel", "arbitrary")

    padded_block = _round_up(tm, sub) * _round_up(tk, 128) * itemsize
    kernel = functools.partial(
        _lane_reduce_kernel, M=M, K=K, tm=tm, tk=tk, full=full,
        acc_dtype=acc_dtype, lane_dense=lane_dense)

    out = pl.pallas_call(
        kernel,
        out_shape=out_shape,
        grid_spec=pltpu.PrefetchScalarGridSpec(
            num_scalar_prefetch=0,
            grid=(grid_m, grid_k),
            in_specs=[pl.BlockSpec((tm, tk), lambda i, k: (i, k))],
            out_specs=out_spec,
            scratch_shapes=[pltpu.VMEM((tm, acc_lanes), acc_dtype)],
        ),
        compiler_params=pltpu.CompilerParams(
            # TODO(synk): confirm megacore sharding of the parallel axis on v7x;
            # switch to pltpu.CORE_PARALLEL if profiling shows one idle TC.
            dimension_semantics=semantics,
            vmem_limit_bytes=_vmem_limit(padded_block, cfg),
        ),
    )(x2)

    if full:
        return out
    if lane_dense:
        return out.reshape(-1)[:M].reshape(M, 1)
    return out


# --------------------------------------------------------------------------
# Kernel 2: reduce the middle (sublane) axis of a (A, K, B) slab -> (A, 1, B).
# Leading/middle reduced-axis blocks with zero wrapper copies, lane-dense out.
# --------------------------------------------------------------------------
def _mid_reduce_kernel(x_ref, o_ref, acc_ref, *, K, tks, acc_dtype):
    ks = pl.program_id(2)
    nks = pl.num_programs(2)

    @pl.when(ks == 0)
    def _():
        acc_ref[...] = jnp.zeros_like(acc_ref)

    chunked = tks > 8 and tks % 8 == 0
    nchunk = tks // 8 if chunked else 1

    def fold(masked):
        def chunk(row0, height):
            if isinstance(row0, int):
                xb = x_ref[0, row0:row0 + height, :]
            else:
                xb = x_ref[0, pl.ds(row0, height), :]
            xb = xb.astype(acc_dtype)
            if masked:
                row = lax.broadcasted_iota(jnp.int32, xb.shape, 0)
                xb = jnp.where(ks * tks + row0 + row < K, xb, 0)
            return xb

        if not chunked:
            return chunk(0, tks)
        if nchunk <= _MAX_UNROLL_CHUNKS:
            s = chunk(0, 8)
            for j in range(1, nchunk):
                s = s + chunk(j * 8, 8)
            return s

        def body(g, s):
            base = pl.multiple_of(g * (_LOOP_GROUP * 8), _LOOP_GROUP * 8)
            for j in range(_LOOP_GROUP):
                s = s + chunk(base + j * 8, 8)
            return s

        return lax.fori_loop(0, nchunk // _LOOP_GROUP, body,
                             jnp.zeros(acc_ref.shape, acc_dtype))

    if (K % tks) != 0:
        @pl.when(ks == nks - 1)
        def _():
            acc_ref[...] += fold(True)

        @pl.when(ks != nks - 1)
        def _():
            acc_ref[...] += fold(False)
    else:
        acc_ref[...] += fold(False)

    @pl.when(ks == nks - 1)
    def _():
        o_ref[0] = jnp.sum(acc_ref[...], axis=0, keepdims=True).astype(o_ref.dtype)


def _pallas_reduce_mid(x3, cfg):
    """Sum a (A, K, B) slab over its middle axis -> (A, 1, B)."""
    A, K, B = x3.shape
    itemsize = jnp.dtype(x3.dtype).itemsize
    sub = _sublane_multiple(x3.dtype)
    acc_dtype, out_dtype = _acc_and_out_dtype(x3.dtype)

    if B >= 128:
        tb = int(min(_round_up(B, 128), 2048))
    else:
        tb = B                                    # equals full dim: always legal
    padded_tb = _round_up(tb, 128)

    if K <= sub:
        tks = K                                   # equals full dim: always legal
    else:
        # Budget real data toward target_block, bounded by padded VMEM footprint
        # (lane padding matters when B < 128).
        real_budget = cfg["target_block"] // max(1, tb * itemsize)
        vmem_budget = _VMEM_BLOCK_CAP // max(1, padded_tb * itemsize)
        budget = max(sub, (min(real_budget, vmem_budget) // sub) * sub)
        tks = int(min(_round_up(K, sub), budget))
        if tks // 8 > _MAX_UNROLL_CHUNKS:
            tks = (tks // (_LOOP_GROUP * 8)) * (_LOOP_GROUP * 8)

    chunked = tks > 8 and tks % 8 == 0
    acc_rows = 8 if chunked else tks

    grid = (A, pl.cdiv(B, tb), pl.cdiv(K, tks))
    padded_block = _round_up(tks, sub) * padded_tb * itemsize
    kernel = functools.partial(_mid_reduce_kernel, K=K, tks=tks, acc_dtype=acc_dtype)

    return pl.pallas_call(
        kernel,
        out_shape=jax.ShapeDtypeStruct((A, 1, B), out_dtype),
        grid_spec=pltpu.PrefetchScalarGridSpec(
            num_scalar_prefetch=0,
            grid=grid,
            in_specs=[pl.BlockSpec((1, tks, tb), lambda a, b, ks: (a, ks, b))],
            out_specs=pl.BlockSpec((1, 1, tb), lambda a, b, ks: (a, 0, b)),
            scratch_shapes=[pltpu.VMEM((acc_rows, tb), acc_dtype)],
        ),
        compiler_params=pltpu.CompilerParams(
            dimension_semantics=("parallel", "parallel", "arbitrary"),
            vmem_limit_bytes=_vmem_limit(padded_block, cfg),
        ),
    )(x3)


def _full_sum(x, cfg):
    """torch.sum(x): full reduction to a 0-d scalar."""
    acc_dtype, out_dtype = _acc_and_out_dtype(x.dtype)
    n = int(np.prod(x.shape)) if x.ndim else 1
    if n == 0:
        return jnp.zeros((), out_dtype)
    flat = x.reshape(-1)
    # Largest divisor of n that is <= 512, preferring multiples of 8 (full
    # sublane occupancy). Awkward/prime n falls back to a single wide row,
    # which the large-tk lane kernel now streams at big block sizes.
    best, best8 = 1, 0
    for d in range(1, min(n, 512) + 1):
        if n % d == 0:
            best = d
            if d % 8 == 0:
                best8 = d
    rows = best8 if best8 else best
    x2 = flat.reshape(rows, n // rows)             # free reshape, one HBM pass
    return _pallas_reduce_rows(x2, cfg, full=True).reshape(())


class ReduceSumPallas:
    """JAX/Pallas equivalent of TorchReduceSum."""

    def __init__(self, axis, keepdims, noop_with_empty_axes):
        self.axis = axis
        self.keepdims = bool(keepdims)
        self.noop_with_empty_axes = bool(noop_with_empty_axes)

    def __call__(self, x):
        cfg = _chip_config()
        ndim = x.ndim

        if self.axis is None:
            if self.noop_with_empty_axes:
                return x
            return _full_sum(x, cfg)

        axes = ((self.axis,) if isinstance(self.axis, (int, np.integer))
                else tuple(self.axis))
        if len(axes) == 0:
            # ONNX ReduceSum: empty axes + noop_with_empty_axes=False -> reduce all.
            if self.noop_with_empty_axes:
                return x
            return _full_sum(x, cfg)

        red = tuple(sorted(set(int(a) % ndim for a in axes)))
        kept = tuple(a for a in range(ndim) if a not in red)
        _, out_dtype = _acc_and_out_dtype(x.dtype)

        if not kept:  # reducing every dim
            out = _full_sum(x, cfg)
            return out.reshape((1,) * ndim) if self.keepdims else out

        kept_shape = tuple(x.shape[a] for a in kept)
        if self.keepdims:
            out_shape = tuple(1 if a in red else x.shape[a] for a in range(ndim))
        else:
            out_shape = kept_shape

        if x.size == 0:
            # torch: sum over an empty reduced dim is 0 (empty if a kept dim is 0).
            return jnp.zeros(out_shape, out_dtype)

        # Split reduced axes into maximal contiguous runs; reduce them back to
        # front with one single-pass kernel each -- no materializing transpose
        # for the common cases, and chained passes instead of a transpose for
        # non-contiguous reduced axes.
        runs, cur = [], [red[0]]
        for a in red[1:]:
            if a == cur[-1] + 1:
                cur.append(a)
            else:
                runs.append(tuple(cur))
                cur = [a]
        runs.append(tuple(cur))

        y = x
        for run in reversed(runs):
            yshape = y.shape
            nd = len(yshape)
            K = int(np.prod([yshape[a] for a in run]))
            if K == 1:   # reducing size-1 dims is a no-op here
                continue
            A = int(np.prod(yshape[:run[0]])) if run[0] > 0 else 1
            B = int(np.prod(yshape[run[-1] + 1:])) if run[-1] + 1 < nd else 1
            new_shape = tuple(1 if a in run else yshape[a] for a in range(nd))
            itemsize = jnp.dtype(y.dtype).itemsize

            if B == 1:
                # Trailing reduced block: free reshape to (A, K), lane reduce.
                r = _pallas_reduce_rows(y.reshape(A, K), cfg)
            elif B * itemsize >= 64:
                # Leading / middle reduced block: free reshape to (A, K, B),
                # sublane reduce -- no transpose copy, lane-dense output.
                r = _pallas_reduce_mid(y.reshape(A, K, B), cfg)
            else:
                # TODO(synk): tiny trailing blocks (B*itemsize < 64 B) still use a
                # materializing XLA transpose before the lane-reduce kernel.
                r = _pallas_reduce_rows(
                    jnp.transpose(y.reshape(A, K, B), (0, 2, 1)).reshape(A * B, K),
                    cfg)
            y = r.reshape(new_shape)

        return y.astype(out_dtype).reshape(out_shape)


if __name__ == "__main__":
    key = jax.random.PRNGKey(0)
    x = jax.random.normal(key, (2, 4, 16, 16), dtype=jnp.float32)

    def close(a, b, rtol=1e-5, atol=1e-3):
        return a.shape == b.shape and bool(jnp.allclose(a, b, rtol=rtol, atol=atol))

    checks = []

    # 1: trailing spatial dims -> lane-reduce kernel.
    y = jax.block_until_ready(ReduceSumPallas((2, 3), False, False)(x))
    checks.append(close(y, jnp.sum(x, axis=(2, 3))))

    # 2: channel dim, keepdims -> middle sublane-reduce kernel (no copies).
    y = jax.block_until_ready(ReduceSumPallas(1, True, False)(x))
    checks.append(close(y, jnp.sum(x, axis=1, keepdims=True)))

    # 3: axis=None, full reduction to a scalar.
    y = jax.block_until_ready(ReduceSumPallas(None, False, False)(x))
    checks.append(close(y, jnp.sum(x), atol=1e-2))

    # 4: axis=None with noop_with_empty_axes=True -> identity.
    y = jax.block_until_ready(ReduceSumPallas(None, False, True)(x))
    checks.append(bool(jnp.array_equal(y, x)))

    # 5: leading axes -> sublane-reduce path with A == 1.
    y = jax.block_until_ready(ReduceSumPallas((0, 1), False, False)(x))
    checks.append(close(y, jnp.sum(x, axis=(0, 1))))

    # 6: non-contiguous reduced axes -> two chained kernel passes (no transpose).
    y = jax.block_until_ready(ReduceSumPallas((0, 2), False, False)(x))
    checks.append(close(y, jnp.sum(x, axis=(0, 2))))

    # 7: ragged lane tile + lane-dense (M multiple of 128) output path.
    x7 = jax.random.normal(jax.random.PRNGKey(1), (128, 300), dtype=jnp.float32)
    y = jax.block_until_ready(ReduceSumPallas(1, False, False)(x7))
    checks.append(close(y, jnp.sum(x7, axis=1), atol=1e-2))

    # 8: long reduction exercising the fori_loop fold + ragged last tile.
    x8 = jax.random.normal(jax.random.PRNGKey(2), (8, 10000), dtype=jnp.float32)
    y = jax.block_until_ready(ReduceSumPallas(-1, False, False)(x8))
    checks.append(close(y, jnp.sum(x8, axis=-1), rtol=1e-4, atol=1e-2))

    # 9: int32 input accumulates exactly in int32.
    x9 = jax.random.randint(jax.random.PRNGKey(3), (2, 4, 16, 16), -8, 8,
                            dtype=jnp.int32)
    y = jax.block_until_ready(ReduceSumPallas((2, 3), False, False)(x9))
    checks.append(y.shape == (2, 4)
                  and bool(jnp.array_equal(y, jnp.sum(x9, axis=(2, 3)))))

    print("KERNEL_OK" if all(checks) else "KERNEL_MISMATCH")
</pallas_src>

<mosaic_0001>
module attributes {stable_mosaic.version = 11 : i64} {
  func.func @_lane_reduce_kernel(%arg0: i32, %arg1: i32, %arg2: memref<8x256xf32, #tpu.memory_space<vmem>>, %arg3: memref<8x1xf32, #tpu.memory_space<vmem>>, %arg4: memref<8x128xf32, #tpu.memory_space<vmem>>) attributes {dimension_semantics = [#tpu.dimension_semantics<parallel>, #tpu.dimension_semantics<arbitrary>], iteration_bounds = array<i64: 1, 1>, scalar_prefetch = 0 : i64, scratch_operands = 1 : i64, tpu.core_type = #tpu.core_type<tc>, window_params = [{transform_indices = @transform_0, window_bounds = array<i64: 8, 256>}, {transform_indices = @transform_1, window_bounds = array<i64: 8, 1>}]} {
    %c0_i32 = arith.constant 0 : i32
    %0 = arith.cmpi eq, %arg1, %c0_i32 : i32
    %1 = arith.extui %0 : i1 to i32
    %c0_i32_0 = arith.constant 0 : i32
    %2 = arith.cmpi ne, %1, %c0_i32_0 : i32
    scf.if %2 {
      %cst = arith.constant 0.000000e+00 : f32
      %12 = vector.broadcast %cst : f32 to vector<8x128xf32>
      %c0_9 = arith.constant 0 : index
      %c0_10 = arith.constant 0 : index
      %13 = vector.load %arg4[%c0_9, %c0_10] : memref<8x128xf32, #tpu.memory_space<vmem>>, vector<8x128xf32>
      tpu.vector_store %arg4[%c0_9, %c0_10], %12 {strides = array<i32>} : memref<8x128xf32, #tpu.memory_space<vmem>>, vector<8x128xf32>,
    } else {
    }
    %c0 = arith.constant 0 : index
    %c0_1 = arith.constant 0 : index
    %3 = vector.load %arg2[%c0, %c0_1] : memref<8x256xf32, #tpu.memory_space<vmem>>, vector<8x128xf32>
    %c0_2 = arith.constant 0 : index
    %c128 = arith.constant 128 : index
    %4 = vector.load %arg2[%c0_2, %c128] : memref<8x256xf32, #tpu.memory_space<vmem>>, vector<8x128xf32>
    %5 = arith.addf %3, %4 : vector<8x128xf32>
    %c0_3 = arith.constant 0 : index
    %c0_4 = arith.constant 0 : index
    %6 = vector.load %arg4[%c0_3, %c0_4] : memref<8x128xf32, #tpu.memory_space<vmem>>, vector<8x128xf32>
    %7 = arith.addf %6, %5 : vector<8x128xf32>
    %c0_5 = arith.constant 0 : index
    %c0_6 = arith.constant 0 : index
    %8 = vector.load %arg4[%c0_5, %c0_6] : memref<8x128xf32, #tpu.memory_space<vmem>>, vector<8x128xf32>
    tpu.vector_store %arg4[%c0_5, %c0_6], %7 {strides = array<i32>} : memref<8x128xf32, #tpu.memory_space<vmem>>, vector<8x128xf32>,
    %c0_i32_7 = arith.constant 0 : i32
    %9 = arith.cmpi eq, %arg1, %c0_i32_7 : i32
    %10 = arith.extui %9 : i1 to i32
    %c0_i32_8 = arith.constant 0 : i32
    %11 = arith.cmpi ne, %10, %c0_i32_8 : i32
    scf.if %11 {
      %c0_9 = arith.constant 0 : index
      %c0_10 = arith.constant 0 : index
      %12 = vector.load %arg4[%c0_9, %c0_10] : memref<8x128xf32, #tpu.memory_space<vmem>>, vector<8x128xf32>
      %cst = arith.constant dense<0.000000e+00> : vector<8xf32>
      %13 = vector.multi_reduction <add>, %12, %cst [1] : vector<8x128xf32> to vector<8xf32>
      %14 = vector.shape_cast %13 : vector<8xf32> to vector<8x1xf32>
      %c0_11 = arith.constant 0 : index
      %c0_12 = arith.constant 0 : index
      %15 = vector.load %arg3[%c0_11, %c0_12] : memref<8x1xf32, #tpu.memory_space<vmem>>, vector<8x1xf32>
      tpu.vector_store %arg3[%c0_11, %c0_12], %14 {strides = array<i32>} : memref<8x1xf32, #tpu.memory_space<vmem>>, vector<8x1xf32>,
    } else {
    }
    return
  }
  func.func @transform_0(%arg0: i32, %arg1: i32) -> (i32, i32) {
    %c0_i32 = arith.constant 0 : i32
    return %arg0, %arg1 : i32, i32
  }
  func.func @transform_1(%arg0: i32, %arg1: i32) -> (i32, i32) {
    %c0_i32 = arith.constant 0 : i32
    %c0_i32_0 = arith.constant 0 : i32
    return %arg0, %c0_i32 : i32, i32
  }
}

</mosaic_0001>

<bundles_post_ra>
// kernel: tpu_custom_call.1
= control target key start
LH: loop header
LB: loop body
LE: loop exit
PB: predicated region body
PF: predicated region fallthrough
CT: control target
= control target key end

     0   :  { %6 = vsyncpa [#allocation4], 0  ;;  %s73_s9 = smov [#allocation3]   ;;  %s90_s0 = inlined_call_operand.hbm [shape: f32[8,256], index: 0, kind: input, shape index: {}]   ;;  %s91_s1 = inlined_call_operand.vmem [shape: f32[8,1], index: 1, kind: output, shape index: {}]  }
   0x1   :  { %s12_s8 = sshll.u32 %s90_s0, 4  ;;  %s14_s10 = sshll.u32 %s73_s9, 4  ;;  %s13_s8 = int_to_ptr.hbm [resolvable:$true] %s12_s8  ;;  %s15_s10 = int_to_ptr.vmem [resolvable:$true] %s14_s10 }
   0x2   :  { %17 = dma.hbm_to_vmem [thread:$0]  %s13_s8, 256, %s15_s10, [#allocation4]  }
   0x3   :  { %71 = dma.done.wait [#allocation4], 256  }
   0x4   :  { %72 = vsyncadd [#allocation4], 4294967040  ;;  %v27_v0 = vld [vmem:[#allocation3] sm:$0xff]  ;;  %v28_v1 = vld [vmem:[#allocation3 + $0x8] sm:$0xff]  ;;  %vm39_vm0 = vcmask 7168  }
   0x5   :  { %v29_v2 = vadd.f32 %v28_v1, %v27_v0 }
   0x7   :  { %37 = vadd.xlane.f32.xlu0 %v29_v2 }
  0x7a   :  { %v38_v3 = vpop.xlane.xlu0 %37 }
  0x7b   :  { %40 = vst.msk [vmem:[%s91_s1] sm:$0xff] %vm39_vm0, %v38_v3 }
  0x7c   :  { %45 = vsyncpa [#allocation4], 1 }

</bundles_post_ra>
